<compile_context>
chip_gen: v7x
topology: tpu7x:2x2x1
jax: 0.10.0
libtpu: 0.0.40
codegen_flags: <defaults>
</compile_context>

<pallas_src>
import functools

import numpy as np
import jax
import jax.numpy as jnp
from jax import lax
from jax.experimental import pallas as pl
from jax.experimental.pallas import tpu as pltpu


# --------------------- kernel 1: conv (single contraction) + partial stats ---------------------
def _conv_stats_kernel(w_ref, a_ref, out_ref, psum_ref, psumsq_ref):
    # w_ref    : (Cout, K)       whole filter, K = Cin*KH*KW (resident across the grid)
    # a_ref    : (K, TM)         im2col tile, lane-dense (TM is a multiple of 128)
    # out_ref  : (Cout, TM)      lane-dense conv output tile
    # psum_ref / psumsq_ref : (1, Cout, 1)  per-grid-step partial channel stats
    acc = jnp.dot(w_ref[...], a_ref[...], preferred_element_type=jnp.float32)  # (Cout, TM) f32
    out_ref[...] = acc.astype(out_ref.dtype)
    # lane-axis reduction (XLU slot; cheap next to the MXU contraction)
    psum_ref[...] = jnp.sum(acc, axis=1, keepdims=True).reshape(psum_ref.shape)
    psumsq_ref[...] = jnp.sum(acc * acc, axis=1, keepdims=True).reshape(psumsq_ref.shape)


# --------------------- kernel 2: fused BatchNorm apply + ReLU (in-place) ------------------------
def _make_bn_relu_kernel(relu):
    def kernel(conv_ref, scale_ref, shift_ref, out_ref):
        # conv_ref/out_ref: (Cout, TM) lane-dense; scale/shift: (Cout, 1) broadcast over lanes
        y = conv_ref[...] * scale_ref[...] + shift_ref[...]
        if relu:
            y = jnp.maximum(y, 0.0)
        out_ref[...] = y.astype(out_ref.dtype)
    return kernel


# --------------------------------------- helpers -----------------------------------------------
def _pick_tile(m_pad):
    """Largest lane-dense tile (multiple of 128) that still leaves >= ~8 pipeline steps."""
    tm = 128
    while tm * 2 <= 2048 and m_pad % (tm * 2) == 0 and m_pad // (tm * 2) >= 8:
        tm *= 2
    return tm


def _im2col_km(x, kh_sz, kw_sz, stride, padding):
    """x: (N, Cin, H, W) -> a: (K, M) with K = Cin*KH*KW, M = N*Ho*Wo (row-major N,Ho,Wo)."""
    n, cin, h, w = x.shape
    ho = (h + 2 * padding - kh_sz) // stride + 1
    wo = (w + 2 * padding - kw_sz) // stride + 1
    xp = jnp.pad(x, ((0, 0), (0, 0), (padding, padding), (padding, padding)))
    taps = []
    for kh in range(kh_sz):
        for kw in range(kw_sz):
            taps.append(
                xp[:, :,
                   kh:kh + stride * (ho - 1) + 1:stride,
                   kw:kw + stride * (wo - 1) + 1:stride])          # (N, Cin, Ho, Wo)
    p = jnp.stack(taps, axis=2)                                     # (N, Cin, KH*KW, Ho, Wo)
    a = jnp.transpose(p, (1, 2, 0, 3, 4)).reshape(cin * kh_sz * kw_sz, n * ho * wo)
    return a, ho, wo


# --------------------------------------- wrapper ------------------------------------------------
@functools.partial(jax.jit, static_argnames=("stride", "padding", "relu", "use_bf16_matmul"))
def conv2d_bn_relu(x, weight, gamma, beta, *, stride=1, padding=1, eps=1e-5,
                   relu=True, use_bf16_matmul=False):
    """PyTorch-equivalent Conv2d(bias=False) -> BatchNorm2d(training batch stats) -> ReLU.

    x      : (N, Cin, H, W)
    weight : (Cout, Cin, KH, KW)
    gamma, beta : (Cout,)
    returns: (N, Cout, Ho, Wo) float32
    """
    n, cin, h, w = x.shape
    cout, cin_w, kh_sz, kw_sz = weight.shape
    assert cin == cin_w
    k = cin * kh_sz * kw_sz

    # im2col (fuses with pad/transpose under this jit -> one relayout pass of the small input)
    a, ho, wo = _im2col_km(x.astype(jnp.float32), kh_sz, kw_sz, stride, padding)  # (K, M)
    m = n * ho * wo
    # Pad the flattened spatial axis up to a lane-width multiple so every tile is lane-dense.
    # Padded columns are all-zero -> conv output 0 -> contribute nothing to sum / sumsq.
    m_pad = ((m + 127) // 128) * 128
    if m_pad != m:
        a = jnp.pad(a, ((0, 0), (0, m_pad - m)))
    w2 = weight.reshape(cout, k).astype(jnp.float32)                               # (Cout, K)

    if use_bf16_matmul:
        # v6e/v7x: bf16 MXU operands, f32 accumulation + f32 stats (keep f32 path for v5e)
        a = a.astype(jnp.bfloat16)
        w2 = w2.astype(jnp.bfloat16)

    tm = _pick_tile(m_pad)
    g = m_pad // tm
    cparams = pltpu.CompilerParams(
        dimension_semantics=("parallel",),          # fully parallel grid -> megacore-shardable
        vmem_limit_bytes=32 * 1024 * 1024,          # explicit scoped VMEM (fits v5e/v6e/v7x)
    )

    conv_cm, psum, psumsq = pl.pallas_call(
        _conv_stats_kernel,
        out_shape=(
            jax.ShapeDtypeStruct((cout, m_pad), jnp.float32),
            jax.ShapeDtypeStruct((g, cout, 1), jnp.float32),
            jax.ShapeDtypeStruct((g, cout, 1), jnp.float32),
        ),
        grid=(g,),
        in_specs=(
            pl.BlockSpec((cout, k), lambda i: (0, 0)),
            pl.BlockSpec((k, tm), lambda i: (0, i)),
        ),
        out_specs=(
            pl.BlockSpec((cout, tm), lambda i: (0, i)),
            pl.BlockSpec((1, cout, 1), lambda i: (i, 0, 0)),
            pl.BlockSpec((1, cout, 1), lambda i: (i, 0, 0)),
        ),
        compiler_params=cparams,
    )(w2, a)

    # Training-mode BatchNorm2d statistics (biased variance). Partial sums reduced here.
    count = jnp.float32(m)                                       # real element count (no pad)
    ch_sum = jnp.sum(psum[:, :, 0], axis=0)                      # (Cout,)
    ch_sumsq = jnp.sum(psumsq[:, :, 0], axis=0)                  # (Cout,)
    mean = ch_sum / count
    var = jnp.maximum(ch_sumsq / count - mean * mean, 0.0)       # clamp: E[x^2]-E[x]^2 guard
    inv_std = lax.rsqrt(var + eps)
    scale = (gamma.astype(jnp.float32) * inv_std).reshape(cout, 1)
    shift = (beta.astype(jnp.float32) - mean * scale[:, 0]).reshape(cout, 1)

    # Fused BN apply + ReLU, writing in-place over the conv buffer (no extra HBM allocation).
    y_cm = pl.pallas_call(
        _make_bn_relu_kernel(relu),
        out_shape=jax.ShapeDtypeStruct((cout, m_pad), jnp.float32),
        grid=(g,),
        in_specs=(
            pl.BlockSpec((cout, tm), lambda i: (0, i)),
            pl.BlockSpec((cout, 1), lambda i: (0, 0)),
            pl.BlockSpec((cout, 1), lambda i: (0, 0)),
        ),
        out_specs=pl.BlockSpec((cout, tm), lambda i: (0, i)),
        input_output_aliases={0: 0},
        compiler_params=cparams,
    )(conv_cm, scale, shift)

    # (Cout, N*Ho*Wo[pad]) -> drop pad -> (N, Cout, Ho, Wo)
    y_cm = y_cm[:, :m]
    return jnp.transpose(y_cm.reshape(cout, n, ho, wo), (1, 0, 2, 3))


# ----------------------------------- pure-JAX reference -----------------------------------------
def _reference(x, weight, gamma, beta, *, stride=1, padding=1, eps=1e-5, relu=True):
    conv = lax.conv_general_dilated(
        x, weight,
        window_strides=(stride, stride),
        padding=[(padding, padding), (padding, padding)],
        dimension_numbers=("NCHW", "OIHW", "NCHW"),
    )
    mean = jnp.mean(conv, axis=(0, 2, 3), keepdims=True)
    var = jnp.mean((conv - mean) ** 2, axis=(0, 2, 3), keepdims=True)
    y = (conv - mean) / jnp.sqrt(var + eps) * gamma.reshape(1, -1, 1, 1) + beta.reshape(1, -1, 1, 1)
    if relu:
        y = jnp.maximum(y, 0.0)
    return y


if __name__ == "__main__":
    # Small shapes consistent with a CasMVSNet 2-D feature block.
    N, Cin, Cout = 2, 4, 8
    H = W = 16

    key = jax.random.PRNGKey(0)
    kx, kw = jax.random.split(key)
    x = jax.random.normal(kx, (N, Cin, H, W), dtype=jnp.float32)
    # Deterministic synthetic Conv2d weight (xavier-scale init, no checkpoint).
    weight = jax.random.normal(kw, (Cout, Cin, 3, 3), dtype=jnp.float32) * 0.1
    gamma = jnp.ones((Cout,), jnp.float32)   # BatchNorm2d default affine init
    beta = jnp.zeros((Cout,), jnp.float32)

    # f32 path (portable: v5e/v6e/v7x)
    out = conv2d_bn_relu(x, weight, gamma, beta, stride=1, padding=1, relu=True)
    out = jax.block_until_ready(out)
    ref = _reference(x, weight, gamma, beta, stride=1, padding=1, relu=True)
    np.testing.assert_allclose(np.asarray(out), np.asarray(ref), rtol=1e-3, atol=1e-3)

    # bf16-operand MXU path (v6e/v7x friendly); loose tolerance for reduced-precision operands.
    out_bf16 = conv2d_bn_relu(x, weight, gamma, beta, stride=1, padding=1, relu=True,
                              use_bf16_matmul=True)
    out_bf16 = jax.block_until_ready(out_bf16)
    np.testing.assert_allclose(np.asarray(out_bf16), np.asarray(ref), rtol=5e-2, atol=5e-2)

    # TODO(synk): BatchNorm2d running-stat (momentum) update is a training-time buffer update,
    # not part of the forward output, and is intentionally not implemented.
    print("KERNEL_OK")
</pallas_src>

<mosaic_0001>
module attributes {stable_mosaic.version = 11 : i64} {
  func.func @_conv_stats_kernel(%arg0: i32, %arg1: memref<8x36xf32, #tpu.memory_space<vmem>>, %arg2: memref<36x128xf32, #tpu.memory_space<vmem>>, %arg3: memref<8x128xf32, #tpu.memory_space<vmem>>, %arg4: memref<1x8x1xf32, #tpu.memory_space<vmem>>, %arg5: memref<1x8x1xf32, #tpu.memory_space<vmem>>) attributes {dimension_semantics = [#tpu.dimension_semantics<parallel>], iteration_bounds = array<i64: 4>, scalar_prefetch = 0 : i64, scratch_operands = 0 : i64, tpu.core_type = #tpu.core_type<tc>, window_params = [{pipeline_mode = #tpu.pipeline_mode<synchronous>, transform_indices = @transform_0, window_bounds = array<i64: 8, 36>}, {transform_indices = @transform_1, window_bounds = array<i64: 36, 128>}, {transform_indices = @transform_2, window_bounds = array<i64: 8, 128>}, {transform_indices = @transform_3, window_bounds = array<i64: 1, 8, 1>}, {transform_indices = @transform_4, window_bounds = array<i64: 1, 8, 1>}]} {
    %c0 = arith.constant 0 : index
    %c0_0 = arith.constant 0 : index
    %0 = vector.load %arg1[%c0, %c0_0] : memref<8x36xf32, #tpu.memory_space<vmem>>, vector<8x36xf32>
    %c0_1 = arith.constant 0 : index
    %c0_2 = arith.constant 0 : index
    %1 = vector.load %arg2[%c0_1, %c0_2] : memref<36x128xf32, #tpu.memory_space<vmem>>, vector<36x128xf32>
    %cst = arith.constant dense<0.000000e+00> : vector<8x128xf32>
    %2 = tpu.matmul %0, %1, %cst {dimension_numbers = #tpu.dot_dimension_numbers<[1], [0], [0], [1], [0, 0, 1, 1], [], []>} : vector<8x36xf32>, vector<36x128xf32>, vector<8x128xf32> -> vector<8x128xf32>
    %c0_3 = arith.constant 0 : index
    %c0_4 = arith.constant 0 : index
    %3 = vector.load %arg3[%c0_3, %c0_4] : memref<8x128xf32, #tpu.memory_space<vmem>>, vector<8x128xf32>
    tpu.vector_store %arg3[%c0_3, %c0_4], %2 {strides = array<i32>} : memref<8x128xf32, #tpu.memory_space<vmem>>, vector<8x128xf32>,
    %cst_5 = arith.constant dense<0.000000e+00> : vector<8xf32>
    %4 = vector.multi_reduction <add>, %2, %cst_5 [1] : vector<8x128xf32> to vector<8xf32>
    %5 = vector.shape_cast %4 : vector<8xf32> to vector<8x1xf32>
    %6 = vector.shape_cast %5 : vector<8x1xf32> to vector<1x8x1xf32>
    %c0_6 = arith.constant 0 : index
    %c0_7 = arith.constant 0 : index
    %c0_8 = arith.constant 0 : index
    %7 = vector.load %arg4[%c0_6, %c0_7, %c0_8] : memref<1x8x1xf32, #tpu.memory_space<vmem>>, vector<1x8x1xf32>
    tpu.vector_store %arg4[%c0_6, %c0_7, %c0_8], %6 {strides = array<i32>} : memref<1x8x1xf32, #tpu.memory_space<vmem>>, vector<1x8x1xf32>,
    %8 = arith.mulf %2, %2 : vector<8x128xf32>
    %cst_9 = arith.constant dense<0.000000e+00> : vector<8xf32>
    %9 = vector.multi_reduction <add>, %8, %cst_9 [1] : vector<8x128xf32> to vector<8xf32>
    %10 = vector.shape_cast %9 : vector<8xf32> to vector<8x1xf32>
    %11 = vector.shape_cast %10 : vector<8x1xf32> to vector<1x8x1xf32>
    %c0_10 = arith.constant 0 : index
    %c0_11 = arith.constant 0 : index
    %c0_12 = arith.constant 0 : index
    %12 = vector.load %arg5[%c0_10, %c0_11, %c0_12] : memref<1x8x1xf32, #tpu.memory_space<vmem>>, vector<1x8x1xf32>
    tpu.vector_store %arg5[%c0_10, %c0_11, %c0_12], %11 {strides = array<i32>} : memref<1x8x1xf32, #tpu.memory_space<vmem>>, vector<1x8x1xf32>,
    return
  }
  func.func @transform_0(%arg0: i32) -> (i32, i32) {
    %c0_i32 = arith.constant 0 : i32
    %c0_i32_0 = arith.constant 0 : i32
    %c0_i32_1 = arith.constant 0 : i32
    return %c0_i32, %c0_i32_0 : i32, i32
  }
  func.func @transform_1(%arg0: i32) -> (i32, i32) {
    %c0_i32 = arith.constant 0 : i32
    %c0_i32_0 = arith.constant 0 : i32
    return %c0_i32, %arg0 : i32, i32
  }
  func.func @transform_2(%arg0: i32) -> (i32, i32) {
    %c0_i32 = arith.constant 0 : i32
    %c0_i32_0 = arith.constant 0 : i32
    return %c0_i32, %arg0 : i32, i32
  }
  func.func @transform_3(%arg0: i32) -> (i32, i32, i32) {
    %c0_i32 = arith.constant 0 : i32
    %c0_i32_0 = arith.constant 0 : i32
    %c0_i32_1 = arith.constant 0 : i32
    return %arg0, %c0_i32, %c0_i32_0 : i32, i32, i32
  }
  func.func @transform_4(%arg0: i32) -> (i32, i32, i32) {
    %c0_i32 = arith.constant 0 : i32
    %c0_i32_0 = arith.constant 0 : i32
    %c0_i32_1 = arith.constant 0 : i32
    return %arg0, %c0_i32, %c0_i32_0 : i32, i32, i32
  }
}

module attributes {stable_mosaic.version = 11 : i64} {
  func.func @kernel(%arg0: i32, %arg1: memref<8x128xf32, #tpu.memory_space<vmem>>, %arg2: memref<8x1xf32, #tpu.memory_space<vmem>>, %arg3: memref<8x1xf32, #tpu.memory_space<vmem>>, %arg4: memref<8x128xf32, #tpu.memory_space<vmem>>) attributes {dimension_semantics = [#tpu.dimension_semantics<parallel>], iteration_bounds = array<i64: 4>, scalar_prefetch = 0 : i64, scratch_operands = 0 : i64, tpu.core_type = #tpu.core_type<tc>, window_params = [{transform_indices = @transform_0, window_bounds = array<i64: 8, 128>}, {pipeline_mode = #tpu.pipeline_mode<synchronous>, transform_indices = @transform_1, window_bounds = array<i64: 8, 1>}, {pipeline_mode = #tpu.pipeline_mode<synchronous>, transform_indices = @transform_2, window_bounds = array<i64: 8, 1>}, {transform_indices = @transform_3, window_bounds = array<i64: 8, 128>}]} {
    %c0 = arith.constant 0 : index
    %c0_0 = arith.constant 0 : index
    %0 = vector.load %arg1[%c0, %c0_0] : memref<8x128xf32, #tpu.memory_space<vmem>>, vector<8x128xf32>
    %c0_1 = arith.constant 0 : index
    %c0_2 = arith.constant 0 : index
    %1 = vector.load %arg2[%c0_1, %c0_2] : memref<8x1xf32, #tpu.memory_space<vmem>>, vector<8x1xf32>
    %2 = vector.broadcast %1 : vector<8x1xf32> to vector<8x128xf32>
    %3 = arith.mulf %0, %2 : vector<8x128xf32>
    %c0_3 = arith.constant 0 : index
    %c0_4 = arith.constant 0 : index
    %4 = vector.load %arg3[%c0_3, %c0_4] : memref<8x1xf32, #tpu.memory_space<vmem>>, vector<8x1xf32>
    %5 = vector.broadcast %4 : vector<8x1xf32> to vector<8x128xf32>
    %6 = arith.addf %3, %5 : vector<8x128xf32>
    %cst = arith.constant 0.000000e+00 : f32
    %7 = vector.broadcast %cst : f32 to vector<8x128xf32>
    %8 = arith.maximumf %6, %7 : vector<8x128xf32>
    %c0_5 = arith.constant 0 : index
    %c0_6 = arith.constant 0 : index
    %9 = vector.load %arg4[%c0_5, %c0_6] : memref<8x128xf32, #tpu.memory_space<vmem>>, vector<8x128xf32>
    tpu.vector_store %arg4[%c0_5, %c0_6], %8 {strides = array<i32>} : memref<8x128xf32, #tpu.memory_space<vmem>>, vector<8x128xf32>,
    return
  }
  func.func @transform_0(%arg0: i32) -> (i32, i32) {
    %c0_i32 = arith.constant 0 : i32
    %c0_i32_0 = arith.constant 0 : i32
    return %c0_i32, %arg0 : i32, i32
  }
  func.func @transform_1(%arg0: i32) -> (i32, i32) {
    %c0_i32 = arith.constant 0 : i32
    %c0_i32_0 = arith.constant 0 : i32
    %c0_i32_1 = arith.constant 0 : i32
    return %c0_i32, %c0_i32_0 : i32, i32
  }
  func.func @transform_2(%arg0: i32) -> (i32, i32) {
    %c0_i32 = arith.constant 0 : i32
    %c0_i32_0 = arith.constant 0 : i32
    %c0_i32_1 = arith.constant 0 : i32
    return %c0_i32, %c0_i32_0 : i32, i32
  }
  func.func @transform_3(%arg0: i32) -> (i32, i32) {
    %c0_i32 = arith.constant 0 : i32
    %c0_i32_0 = arith.constant 0 : i32
    return %c0_i32, %arg0 : i32, i32
  }
}

</mosaic_0001>

<bundles_post_ra>
// kernel: conv2d_bn_relu.3
= control target key start
LH: loop header
LB: loop body
LE: loop exit
PB: predicated region body
PF: predicated region fallthrough
CT: control target
= control target key end

     0   :  { %s284_s12 = smov 0   ;;  %s301_s0 = inlined_call_operand.vmem [shape: f32[8,512], index: 0, kind: input, shape index: {}, may-alias: {0,3}]   ;;  %s302_s1 = inlined_call_operand.vmem [shape: f32[8,1], index: 1, kind: input, shape index: {}]   ;;  %s303_s2 = inlined_call_operand.vmem [shape: f32[8,1], index: 2, kind: input, shape index: {}]   ;;  %s304_s3 = inlined_call_operand.vmem [shape: f32[8,512], index: 3, kind: output, shape index: {}, may-alias: {0,3}]  }
   0x1 LB: > { %s236_s13 = sadd.s32 4294967295, %s261_s12   ;;  %p240_p0 = scmp.ge.s32.totalorder %s261_s12, 1  ;;  %s261_s12 = sphi %s284_s12, %s13_s12  }
   0x2   : > { %p136_p1 = scmp.lt.s32.totalorder %s261_s12, 5 }
   0x4   : > { %p137_p2 = pnand %p240_p0, %p136_p1 }
   0x5   : > { %v167_v0 = vld [vmem:[%s302_s1] sm:$0xff] (!%p137_p2)  ;;  %v263_v1 = vmov (!%p137_p2), 0   ;;  %p158_p3 = scmp.lt.s32.totalorder (!%p137_p2), %s236_s13, 3 }
   0x6   : > { %140 = sbr.rel (%p137_p2) target bundleno = 144 (0x90), region = 32  ;;  %254 = vset.pattern.permute.xlu0 (!%p137_p2), %v263_v1  ;;  %v174_v2 = vld [vmem:[%s303_s2] sm:$0xff] (!%p137_p2) }
   0x7   : > { %170 = vperm.xlu0 (!%p137_p2), %254, %v167_v0  }
   0xb   : > { %177 = vperm.xlu0 (!%p137_p2), %254, %v174_v2  }
   0xd   : > { %s306_s13 = smov (!%p158_p3, %s236_s13), 3 }
   0xe   : > { %s241_s18 = sshll.u32 %s306_s13, 3 }
   0xf   : > { %s161_s21 = scalar_lea.vmem %s301_s0, %s241_s18  ;;  %s165_s24 = scalar_lea.vmem %s304_s3, %s241_s18 }
  0x10   : > { %v166_v4 = vld [vmem:[%s161_s21] sm:$0xff] }
  0x86   : > { %v171_v3 = vpop.permute.xlu0 %170 }
  0x87   : > { %v173_v5 = vmul.f32 %v171_v3, %v166_v4 }
  0x8a   : > { %v178_v6 = vpop.permute.xlu0 %177 }
  0x8b   : > { %v180_v7 = vadd.f32 %v178_v6, %v173_v5 }
  0x8d   : > { %v181_v8 = vmax.f32 %v180_v7, 0.0 }
  0x8f   : > { %182 = vst [vmem:[%s165_s24] sm:$0xff] %v181_v8 }
  0x90 PF: > { %s13_s12 = sadd.s32 1, %s261_s12  }
  0x91   : > { %p10_p4 = scmp.ge.s32.totalorder %s13_s12, 6  }
  0x93   :  { %12 = sbr.rel (!%p10_p4) target bundleno = 1 (0x1), region = 62 }

// kernel: conv2d_bn_relu.2
= control target key start
LH: loop header
LB: loop body
LE: loop exit
PB: predicated region body
PF: predicated region fallthrough
CT: control target
= control target key end

     0   :  { %s600_s15 = smov 0   ;;  %s602_s16 = smov 0   ;;  %s663_s0 = inlined_call_operand.vmem [shape: f32[8,36], index: 0, kind: input, shape index: {}]   ;;  %s664_s1 = inlined_call_operand.vmem [shape: f32[36,512], index: 1, kind: input, shape index: {}]   ;;  %s665_s2 = inlined_call_operand.vmem [shape: f32[8,512], index: 2, kind: output, shape index: {0}]   ;;  %s666_s3 = inlined_call_operand.vmem [shape: f32[4,8,1], index: 3, kind: output, shape index: {1}]   ;;  %s667_s4 = inlined_call_operand.vmem [shape: f32[4,8,1], index: 4, kind: output, shape index: {2}]  }
   0x1   :  { %s604_s17 = smov 0  }
   0x2 LB: > { %s481_s18 = sadd.s32 4294967295, %s570_s17   ;;  %s617_s19 = sadd.s32 1, %s570_s17   ;;  %s570_s17 = sphi %s604_s17, %s670_s17   ;;  %s566_s16 = sphi %s602_s16, %s669_s16   ;;  %s562_s15 = sphi %s600_s15, %s668_s15  }
   0x3   : > { %s40_s20 = ssub.s32 %s570_s17, %s617_s19  ;;  %s43_s21 = sadd.s32 1, %s566_s16 }
   0x4   : > { %p41_p0 = scmp.eq.s32.totalorder %s40_s20, 0  ;;  %p50_p1 = scmp.ne.s32.totalorder %s566_s16, %s562_s15 }
   0x5   : > { %p51_p2 = scmp.eq.s32.totalorder %s570_s17, 0  ;;  %p484_p4 = scmp.ge.s32.totalorder %s570_s17, 4 }
   0x6   : > { %s626_s22 = scalar_select %p41_p0, %s566_s16, %s43_s21  }
   0x7   : > { %p52_p3 = por %p51_p2, %p50_p1  ;;  %157 = sbr.rel (%p484_p4) target bundleno = 23 (0x17), region = 20 }
   0xe   : > { %160 = sbr.rel (!%p52_p3) target bundleno = 23 (0x17), region = 24  ;;  %s162_s23 = sand.u32 (%p52_p3), 1, %s566_s16  }
   0xf   : > { %s485_s24 = sshll.u32 (%p52_p3), %s570_s17, 3  ;;  %s519_s25 = smul.u32 (%p52_p3), 40, %s162_s23 }
  0x10   : > { %s166_s28 = scalar_lea.vmem (%p52_p3), %s664_s1, %s485_s24 }
  0x11   : > { %v202_v0 = vld [vmem:[%s166_s28] sm:$0xff] (%p52_p3)  ;;  %s164_s29 = scalar_lea.vmem (%p52_p3), [#allocation2], %s519_s25 }
  0x12   : > { %v204_v1 = vld [vmem:[%s166_s28 + $0x20] sm:$0xff] (%p52_p3)  ;;  %203 = vst [vmem:[%s164_s29] sm:$0xff] (%p52_p3), %v202_v0 }
  0x13   : > { %v206_v2 = vld [vmem:[%s166_s28 + $0x40] sm:$0xff] (%p52_p3)  ;;  %205 = vst [vmem:[%s164_s29 + $0x8] sm:$0xff] (%p52_p3), %v204_v1 }
  0x14   : > { %v208_v3 = vld [vmem:[%s166_s28 + $0x60] sm:$0xff] (%p52_p3)  ;;  %207 = vst [vmem:[%s164_s29 + $0x10] sm:$0xff] (%p52_p3), %v206_v2 }
  0x15   : > { %v210_v4 = vld [vmem:[%s166_s28 + $0x80] sm:$0xff]  ;;  %209 = vst [vmem:[%s164_s29 + $0x18] sm:$0xff] %v208_v3 }
  0x16   : > { %211 = vst [vmem:[%s164_s29 + $0x20] sm:$0xff] %v210_v4 }
  0x17 PF: > { %p486_p5 = scmp.ge.s32.totalorder %s570_s17, 1  ;;  %p216_p6 = scmp.lt.s32.totalorder %s570_s17, 5 }
  0x19   : > { %p217_p7 = pnand %p486_p5, %p216_p6 }
  0x1a   : > { %s223_s30 = sand.u32 (!%p217_p7), 1, %s562_s15   ;;  %v572_v5 = vmov (!%p217_p7), 0.0|0.0   ;;  %vm573_vm0 = vmmov (!%p217_p7), 0   ;;  %v574_v6 = vmov (!%p217_p7), 0.0   ;;  %vm277_vm1 = vcmask (!%p217_p7), 1043456   ;;  %v267_v14 = vld [vmem:[%s663_s0] sm:$0xff] (!%p217_p7) }
  0x1b   : > { %220 = sbr.rel (%p217_p7) target bundleno = 402 (0x192), region = 62  ;;  %513 = vmatprep.subr.bf16.mxu0 (!%p217_p7), %v572_v5  ;;  %510 = vmatprep.mubr.msk.f32.mxu0 (!%p217_p7), %vm573_vm0, %v574_v6  ;;  %vm273_vm2 = vcmask (!%p217_p7), 293888   ;;  %p255_p8 = scmp.lt.s32.totalorder (!%p217_p7), %s481_s18, 3  ;;  %vm354_vm3 = vcmask (!%p217_p7), 7168  }
  0x1c   : > { %s520_s5 = smul.u32 (!%p217_p7), 40, %s223_s30 }
  0x1e   : > { %s225_s6 = scalar_lea.vmem (!%p217_p7), [#allocation2], %s520_s5 }
  0x1f   : > { %v268_v7 = vld [vmem:[%s225_s6] sm:$0xff] (!%p217_p7)  ;;  %v269_v8 = vld [vmem:[%s225_s6 + $0x8] sm:$0xff] (!%p217_p7)  ;;  %v270_v9 = vld [vmem:[%s225_s6 + $0x10] sm:$0xff] (!%p217_p7) }
  0x20   : > { %v514_v10 = vpack.c.bf16 (!%p217_p7), %v269_v8, %v268_v7  ;;  %v271_v11 = vld [vmem:[%s225_s6 + $0x18] sm:$0xff] (!%p217_p7)  ;;  %v272_v13 = vld [vmem:[%s225_s6 + $0x20] sm:$0xf] (!%p217_p7) }
  0x21   : > { %v517_v12 = vpack.c.bf16 (!%p217_p7), %v271_v11, %v270_v9 }
  0x22   : > { %515 = vmatpush3.bf16.msra.mxu0 %v514_v10  ;;  %s672_s18 = smov (!%p255_p8, %s481_s18), 3 }
  0x23   : > { %516 = vmatprep.subr.bf16.mxu0 %v572_v5  ;;  %s487_s9 = sshll.u32 %s672_s18, 3 }
  0x24   : > { %s258_s12 = scalar_lea.vmem %s665_s2, %s487_s9  ;;  %s262_s15 = scalar_lea.vmem %s666_s3, %s487_s9 }
  0x25   : > { %s266_s18 = scalar_lea.vmem %s667_s4, %s487_s9 }
  0x26   : > { %518 = vmatpush3.bf16.msra.mxu0 %v517_v12 }
  0x27   : > { %508 = vmatprep.subr.mxu0 %v574_v6 }
  0x2a   : > { %509 = vmatpush3.msk.msra.mxu0 %vm277_vm1, %v272_v13 }
  0x2b   : > { %511 = vmatmul.mubr.msk.f32.vlgmr.msra.gmra.mrb[0].mxu0 %vm273_vm2, %v267_v14 }
  0xfe   : > { %v347_v15 = vpop.f32.mrb[0].mxu0 }
  0xff   : > { %351 = vst [vmem:[%s258_s12] sm:$0xff] %v347_v15  ;;  %352 = vadd.xlane.f32.xlu0 %v347_v15  ;;  %v512_v16 = vpop.f32.mrb[1].mxu0  ;;  %v356_v17 = vmul.f32 %v347_v15, %v347_v15 }
 0x103   : > { %357 = vadd.xlane.f32.xlu0 %v356_v17 }
 0x18c   : > { %v353_v18 = vpop.xlane.xlu0 %352 }
 0x18d   : > { %355 = vst.msk [vmem:[%s262_s15] sm:$0xff] %vm354_vm3, %v353_v18 }
 0x190   : > { %v358_v19 = vpop.xlane.xlu0 %357 }
 0x191   : > { %359 = vst.msk [vmem:[%s266_s18] sm:$0xff] %vm354_vm3, %v358_v19 }
 0x192 PF: > { %p12_p9 = scmp.ge.s32.totalorder %s617_s19, 6   ;;  %s668_s15 = smov %s566_s16 }
 0x193   : > { %s669_s16 = smov %s626_s22  ;;  %s670_s17 = smov %s617_s19 }
 0x194   :  { %14 = sbr.rel (!%p12_p9) target bundleno = 2 (0x2), region = 125 }

</bundles_post_ra>
